<compile_context>
chip_gen: v7x
topology: tpu7x:2x2x1
jax: 0.10.0
libtpu: 0.0.40
codegen_flags: <defaults>
</compile_context>

<pallas_src>
import functools

import jax
import jax.numpy as jnp
from jax.experimental import pallas as pl
from jax.experimental.pallas import tpu as pltpu

LN_EPS = 1e-5
MIB = 1024 * 1024


def _round_up(a, b):
    return ((a + b - 1) // b) * b


# ----------------------------------------------------------------------------
# Kernel: fused LayerNorm(4C) + bias-free Linear(4C -> 2*dim) on row tiles.
# ----------------------------------------------------------------------------
def _merge_kernel(x_ref, w_ref, aux_ref, o_ref):
    # x_ref  : (tn, 4C)    merged-patch rows (input dtype)
    # w_ref  : (4C, tcol)  gamma-scaled weight slice (compute dtype)
    # aux_ref: (2, tcol)   f32; row 0 = colsum(w_scaled), row 1 = beta @ W^T
    # o_ref  : (tn, tcol)
    x = x_ref[...]
    xf = x.astype(jnp.float32)
    n_feat = xf.shape[-1]

    # One-pass LN statistics in f32 (cross-lane reductions -> XLU slot).
    # TODO(synk): switch to a two-pass variance if activations ever have a
    # large common mean (E[x^2]-E[x]^2 is cancellation-prone).
    s1 = jnp.sum(xf, axis=-1, keepdims=True)
    s2 = jnp.sum(xf * xf, axis=-1, keepdims=True)
    mean = s1 * (1.0 / n_feat)
    var = s2 * (1.0 / n_feat) - mean * mean
    inv = jax.lax.rsqrt(var + LN_EPS)

    # Raw matmul on un-normalized x (MXU, f32 accumulation); LN scale/shift is
    # applied on the narrow output tile:
    #   y = inv * (x @ Wg - mean * colsum(Wg)) + beta @ W^T
    raw = jnp.dot(x.astype(w_ref.dtype), w_ref[...],
                  preferred_element_type=jnp.float32)
    colsum = aux_ref[0:1, :]
    bias = aux_ref[1:2, :]
    o_ref[...] = (inv * (raw - mean * colsum) + bias).astype(o_ref.dtype)


# ----------------------------------------------------------------------------
# One-time parameter folding (hoisted out of the per-call forward).
# ----------------------------------------------------------------------------
def fold_patch_merging_params(gamma, beta, weight, *,
                              compute_dtype=jnp.bfloat16):
    """Fold LN affine + feature permutation into the Linear weight.

    gamma/beta: (4*dim,), weight: (2*dim, 4*dim) from nn.Linear(4d, 2d, bias=False).
    Returns (w_scaled(4C, out_pad), aux(2, out_pad) f32, out_dim).
    """
    out_dim, four_c = weight.shape
    C = four_c // 4
    assert 4 * C == four_c

    # The space-to-depth reshape produces feature order (dh, dw, c); map the
    # PyTorch concat order [x0(ee), x1(oe), x2(eo), x3(oo)] onto it.
    blk = jnp.array([[0, 2], [1, 3]], dtype=jnp.int32)            # blk[dh, dw]
    inv_perm = (blk[:, :, None] * C
                + jnp.arange(C, dtype=jnp.int32)[None, None, :]).reshape(-1)

    wt = weight.astype(jnp.float32).T[inv_perm, :]                # (4C, out)
    g = gamma.astype(jnp.float32)[inv_perm]
    b = beta.astype(jnp.float32)[inv_perm]

    w_scaled = g[:, None] * wt                                    # gamma folded
    bias = b @ wt                                                 # beta folded

    # Lane-dense output columns: pad out_dim up to a multiple of 128.
    out_pad = _round_up(max(out_dim, 128), 128)
    if out_pad != out_dim:
        w_scaled = jnp.pad(w_scaled, ((0, 0), (0, out_pad - out_dim)))
        bias = jnp.pad(bias, (0, out_pad - out_dim))

    w_scaled = w_scaled.astype(compute_dtype)
    colsum = jnp.sum(w_scaled.astype(jnp.float32), axis=0)        # (out_pad,)
    aux = jnp.stack([colsum, bias]).astype(jnp.float32)           # (2, out_pad)
    return w_scaled, aux, int(out_dim)


# ----------------------------------------------------------------------------
# Generation-aware VMEM budget / TensorCore count.
# ----------------------------------------------------------------------------
@functools.lru_cache(maxsize=None)
def _tpu_vmem_budget():
    """Returns (vmem_limit_cap, tiling_budget, assumed_tensorcores)."""
    vmem_cap = None
    try:
        vmem_cap = int(pltpu.get_tpu_info().vmem_capacity_bytes)
    except Exception:
        pass
    if vmem_cap is not None and vmem_cap > 64 * MIB:
        # v5e / v6e class: 128 MiB physical VMEM, single TensorCore per chip.
        return 48 * MIB, 40 * MIB, 1
    # v7x class (64 MiB per TC, 2 TCs) -- also the conservative fallback.
    return 40 * MIB, 32 * MIB, 2


def _choose_row_tile(rows, cap):
    """Largest row tile <= cap; prefer an exact divisor of rows (no padding)."""
    cap = max(8, min(cap, rows))
    if rows <= cap:
        return rows                       # single full-extent tile is legal
    best_div = None
    for t in range(cap - cap % 8, 7, -8):             # multiples of 8 only
        if rows % t == 0:
            best_div = t
            break
    if best_div is not None and best_div * 4 >= cap:
        return best_div                   # close enough to target: skip padding
    return max(8, cap - cap % 8)          # fall back to a padded last tile


# ----------------------------------------------------------------------------
# Forward pass (jitted).  Takes pre-folded parameters.
# ----------------------------------------------------------------------------
@functools.partial(jax.jit, static_argnames=("out_dim",))
def patch_merging_apply(x, w_scaled, aux, *, out_dim):
    B, C, H, W = x.shape
    assert H % 2 == 0 and W % 2 == 0, f"x size ({H}*{W}) are not even."
    four_c, out_pad = w_scaled.shape
    assert four_c == 4 * C
    Hh, Wh = H // 2, W // 2
    rows = B * Hh * Wh

    # Space-to-depth via one reshape+transpose (no strided slices / concat).
    xm = jnp.transpose(x.reshape(B, C, Hh, 2, Wh, 2), (0, 2, 4, 3, 5, 1))
    xm = xm.reshape(rows, four_c)          # feature k = dh*2C + dw*C + c

    x_size = jnp.dtype(x.dtype).itemsize
    w_size = jnp.dtype(w_scaled.dtype).itemsize
    o_size = x_size
    vmem_cap_limit, budget, n_tc = _tpu_vmem_budget()

    def resident_bytes(tc):
        # Weight + aux tiles (double-buffered by the default pipeline).
        # TODO(synk): pipeline_mode=pl.Buffered(1) on these invariant operands
        # would halve this once verified on the deployed JAX version.
        return 2 * four_c * tc * w_size + 2 * 2 * tc * 4

    def per_row_bytes(tc):
        # Double-buffered x tile + double-buffered out tile + in-kernel temps.
        return (2 * four_c * x_size + 2 * tc * o_size
                + four_c * max(w_size, 4) + tc * 4 + 64)

    # --- column tiling: only kicks in when the resident weight would squeeze
    # the row tile too hard (huge 4C / out_dim). ---
    tcol = out_pad
    min_rows_tile = min(_round_up(rows, 8), 64)
    if budget - resident_bytes(tcol) < per_row_bytes(tcol) * min_rows_tile:
        tcol = 128
        for cand in range(out_pad - 128, 127, -128):
            if out_pad % cand == 0 and (
                    budget - resident_bytes(cand)
                    >= per_row_bytes(cand) * min_rows_tile):
                tcol = cand
                break
    n_col = out_pad // tcol

    # --- row tiling against the REMAINING budget (weight charged once, not
    # against tn). ---
    avail = budget - resident_bytes(tcol)
    tn_cap = max(8, avail // per_row_bytes(tcol))
    tn_cap = min(tn_cap, 1024)
    if n_tc >= 2 and rows > 16:
        tn_cap = min(tn_cap, (rows + 1) // 2)   # give both v7x TCs work
    tn = _choose_row_tile(rows, tn_cap)

    n_row = -(-rows // tn)
    rows_pad = n_row * tn
    if rows_pad != rows:
        xm = jnp.pad(xm, ((0, rows_pad - rows), (0, 0)))   # zero rows are benign

    used = resident_bytes(tcol) + per_row_bytes(tcol) * tn
    vmem_limit = int(min(max(used + 8 * MIB, 32 * MIB), vmem_cap_limit))

    out = pl.pallas_call(
        _merge_kernel,
        out_shape=jax.ShapeDtypeStruct((rows_pad, out_pad), x.dtype),
        grid_spec=pltpu.PrefetchScalarGridSpec(
            num_scalar_prefetch=0,
            grid=(n_row, n_col),
            in_specs=[
                pl.BlockSpec((tn, four_c), lambda i, j: (i, 0)),
                pl.BlockSpec((four_c, tcol), lambda i, j: (0, j)),
                pl.BlockSpec((2, tcol), lambda i, j: (0, j)),
            ],
            out_specs=pl.BlockSpec((tn, tcol), lambda i, j: (i, j)),
        ),
        compiler_params=pltpu.CompilerParams(
            dimension_semantics=("parallel", "parallel"),
            vmem_limit_bytes=vmem_limit,
            # Let XLA fuse the space-to-depth transpose into input 0's stream.
            allow_input_fusion=[True, False, False],
        ),
    )(xm, w_scaled, aux)

    y = out[:rows, :out_dim].reshape(B, Hh, Wh, out_dim)
    # TODO(synk): if the surrounding model is NHWC end-to-end, return y here
    # and drop both boundary NCHW<->NHWC permutes.
    return jnp.transpose(y, (0, 3, 1, 2))


def patch_merging(x, gamma, beta, weight, *, compute_dtype=jnp.bfloat16):
    """Drop-in forward (folds params every call).

    For repeated use, call fold_patch_merging_params() once and reuse
    patch_merging_apply().  Default compute_dtype=bf16 halves the weight /
    MXU-operand bytes (LN stats & accumulation stay f32) -- pass
    compute_dtype=jnp.float32 for bit-close f32 results.
    """
    w_scaled, aux, out_dim = fold_patch_merging_params(
        gamma, beta, weight, compute_dtype=compute_dtype)
    return patch_merging_apply(x, w_scaled, aux, out_dim=out_dim)


# ----------------------------------------------------------------------------
# Pure-JAX reference mirroring the PyTorch forward exactly.
# ----------------------------------------------------------------------------
def _reference(x, gamma, beta, weight):
    B, C, H, W = x.shape
    out_dim = weight.shape[0]
    xh = jnp.transpose(x, (0, 2, 3, 1))
    x0 = xh[:, 0::2, 0::2, :]
    x1 = xh[:, 1::2, 0::2, :]
    x2 = xh[:, 0::2, 1::2, :]
    x3 = xh[:, 1::2, 1::2, :]
    xm = jnp.concatenate([x0, x1, x2, x3], axis=-1).reshape(B, -1, 4 * C)
    mean = jnp.mean(xm, axis=-1, keepdims=True)
    var = jnp.mean((xm - mean) ** 2, axis=-1, keepdims=True)
    xn = (xm - mean) / jnp.sqrt(var + LN_EPS) * gamma + beta
    y = xn @ weight.T
    y = y.reshape(B, H // 2, W // 2, out_dim)
    return jnp.transpose(y, (0, 3, 1, 2))


if __name__ == "__main__":
    key = jax.random.PRNGKey(0)
    B, C, H, W = 2, 4, 16, 16
    dim = C
    out_dim = 2 * dim          # PatchMerging: Linear(4*dim -> 2*dim, bias=False)

    kx, kw, kg, kb = jax.random.split(key, 4)
    x = jax.random.normal(kx, (B, C, H, W), dtype=jnp.float32)
    weight = jax.random.normal(kw, (out_dim, 4 * dim), dtype=jnp.float32) * 0.05
    gamma = 1.0 + 0.1 * jax.random.normal(kg, (4 * dim,), dtype=jnp.float32)
    beta = 0.1 * jax.random.normal(kb, (4 * dim,), dtype=jnp.float32)

    y_ref = _reference(x, gamma, beta, weight)

    # Exact f32 path (one-time param folding + jitted apply).
    w32, aux32, od = fold_patch_merging_params(
        gamma, beta, weight, compute_dtype=jnp.float32)
    y32 = jax.block_until_ready(patch_merging_apply(x, w32, aux32, out_dim=od))
    assert y32.shape == (B, out_dim, H // 2, W // 2)
    assert jnp.allclose(y32, y_ref, atol=1e-5, rtol=1e-5), \
        float(jnp.max(jnp.abs(y32 - y_ref)))

    # Default fast path: bf16 MXU operands, f32 stats/accumulation (looser tol).
    y16 = jax.block_until_ready(patch_merging(x, gamma, beta, weight))
    assert y16.shape == (B, out_dim, H // 2, W // 2)
    assert jnp.allclose(y16, y_ref, atol=5e-2, rtol=5e-2), \
        float(jnp.max(jnp.abs(y16 - y_ref)))

    # Larger spatial size to exercise multiple row tiles / the 2D grid.
    x2 = jax.random.normal(kx, (2, 4, 64, 64), dtype=jnp.float32)
    y2 = jax.block_until_ready(patch_merging_apply(x2, w32, aux32, out_dim=od))
    y2_ref = _reference(x2, gamma, beta, weight)
    assert y2.shape == (2, out_dim, 32, 32)
    assert jnp.allclose(y2, y2_ref, atol=1e-5, rtol=1e-5), \
        float(jnp.max(jnp.abs(y2 - y2_ref)))

    print("KERNEL_OK")
</pallas_src>

<mosaic_0001>
module attributes {stable_mosaic.version = 11 : i64} {
  func.func @_merge_kernel(%arg0: i32, %arg1: i32, %arg2: memref<64x16xf32, #tpu.memory_space<vmem>>, %arg3: memref<16x128xf32, #tpu.memory_space<vmem>>, %arg4: memref<2x128xf32, #tpu.memory_space<vmem>>, %arg5: memref<64x128xf32, #tpu.memory_space<vmem>>) attributes {dimension_semantics = [#tpu.dimension_semantics<parallel>, #tpu.dimension_semantics<parallel>], iteration_bounds = array<i64: 2, 1>, scalar_prefetch = 0 : i64, scratch_operands = 0 : i64, tpu.core_type = #tpu.core_type<tc>, window_params = [{transform_indices = @transform_0, window_bounds = array<i64: 64, 16>}, {transform_indices = @transform_1, window_bounds = array<i64: 16, 128>}, {transform_indices = @transform_2, window_bounds = array<i64: 2, 128>}, {transform_indices = @transform_3, window_bounds = array<i64: 64, 128>}]} {
    %c0 = arith.constant 0 : index
    %c0_0 = arith.constant 0 : index
    %0 = vector.load %arg2[%c0, %c0_0] : memref<64x16xf32, #tpu.memory_space<vmem>>, vector<64x16xf32>
    %cst = arith.constant dense<0.000000e+00> : vector<64xf32>
    %1 = vector.multi_reduction <add>, %0, %cst [1] : vector<64x16xf32> to vector<64xf32>
    %2 = vector.shape_cast %1 : vector<64xf32> to vector<64x1xf32>
    %3 = arith.mulf %0, %0 : vector<64x16xf32>
    %cst_1 = arith.constant dense<0.000000e+00> : vector<64xf32>
    %4 = vector.multi_reduction <add>, %3, %cst_1 [1] : vector<64x16xf32> to vector<64xf32>
    %5 = vector.shape_cast %4 : vector<64xf32> to vector<64x1xf32>
    %cst_2 = arith.constant 6.250000e-02 : f32
    %6 = vector.broadcast %cst_2 : f32 to vector<64x1xf32>
    %7 = arith.mulf %2, %6 : vector<64x1xf32>
    %cst_3 = arith.constant 6.250000e-02 : f32
    %8 = vector.broadcast %cst_3 : f32 to vector<64x1xf32>
    %9 = arith.mulf %5, %8 : vector<64x1xf32>
    %10 = arith.mulf %7, %7 : vector<64x1xf32>
    %11 = arith.subf %9, %10 : vector<64x1xf32>
    %cst_4 = arith.constant 9.99999974E-6 : f32
    %12 = vector.broadcast %cst_4 : f32 to vector<64x1xf32>
    %13 = arith.addf %11, %12 : vector<64x1xf32>
    %14 = math.rsqrt %13 : vector<64x1xf32>
    %c0_5 = arith.constant 0 : index
    %c0_6 = arith.constant 0 : index
    %15 = vector.load %arg3[%c0_5, %c0_6] : memref<16x128xf32, #tpu.memory_space<vmem>>, vector<16x128xf32>
    %cst_7 = arith.constant dense<0.000000e+00> : vector<64x128xf32>
    %16 = tpu.matmul %0, %15, %cst_7 {dimension_numbers = #tpu.dot_dimension_numbers<[1], [0], [0], [1], [0, 0, 1, 1], [], []>} : vector<64x16xf32>, vector<16x128xf32>, vector<64x128xf32> -> vector<64x128xf32>
    %c0_8 = arith.constant 0 : index
    %c0_9 = arith.constant 0 : index
    %17 = vector.load %arg4[%c0_8, %c0_9] : memref<2x128xf32, #tpu.memory_space<vmem>>, vector<1x128xf32>
    %c1 = arith.constant 1 : index
    %c0_10 = arith.constant 0 : index
    %18 = vector.load %arg4[%c1, %c0_10] : memref<2x128xf32, #tpu.memory_space<vmem>>, vector<1x128xf32>
    %19 = vector.broadcast %7 : vector<64x1xf32> to vector<64x128xf32>
    %20 = vector.broadcast %17 : vector<1x128xf32> to vector<64x128xf32>
    %21 = arith.mulf %19, %20 : vector<64x128xf32>
    %22 = arith.subf %16, %21 : vector<64x128xf32>
    %23 = vector.broadcast %14 : vector<64x1xf32> to vector<64x128xf32>
    %24 = arith.mulf %23, %22 : vector<64x128xf32>
    %25 = vector.broadcast %18 : vector<1x128xf32> to vector<64x128xf32>
    %26 = arith.addf %24, %25 : vector<64x128xf32>
    %c0_11 = arith.constant 0 : index
    %c0_12 = arith.constant 0 : index
    %27 = vector.load %arg5[%c0_11, %c0_12] : memref<64x128xf32, #tpu.memory_space<vmem>>, vector<64x128xf32>
    tpu.vector_store %arg5[%c0_11, %c0_12], %26 {strides = array<i32>} : memref<64x128xf32, #tpu.memory_space<vmem>>, vector<64x128xf32>,
    return
  }
  func.func @transform_0(%arg0: i32, %arg1: i32) -> (i32, i32) {
    %c0_i32 = arith.constant 0 : i32
    %c0_i32_0 = arith.constant 0 : i32
    return %arg0, %c0_i32 : i32, i32
  }
  func.func @transform_1(%arg0: i32, %arg1: i32) -> (i32, i32) {
    %c0_i32 = arith.constant 0 : i32
    %c0_i32_0 = arith.constant 0 : i32
    return %c0_i32, %arg1 : i32, i32
  }
  func.func @transform_2(%arg0: i32, %arg1: i32) -> (i32, i32) {
    %c0_i32 = arith.constant 0 : i32
    %c0_i32_0 = arith.constant 0 : i32
    return %c0_i32, %arg1 : i32, i32
  }
  func.func @transform_3(%arg0: i32, %arg1: i32) -> (i32, i32) {
    %c0_i32 = arith.constant 0 : i32
    return %arg0, %arg1 : i32, i32
  }
}

</mosaic_0001>

<bundles_post_ra>
// kernel: patch_merging_apply.1
= control target key start
LH: loop header
LB: loop body
LE: loop exit
PB: predicated region body
PF: predicated region fallthrough
CT: control target
= control target key end

     0   :  { %s766_s12 = smov 0   ;;  %s768_s13 = smov 0   ;;  %s862_s0 = inlined_call_operand.vmem [shape: f32[128,16], index: 0, kind: input, shape index: {}]   ;;  %s863_s1 = inlined_call_operand.vmem [shape: f32[16,128], index: 1, kind: input, shape index: {}]   ;;  %s864_s2 = inlined_call_operand.vmem [shape: f32[2,128], index: 2, kind: input, shape index: {}]   ;;  %s865_s3 = inlined_call_operand.vmem [shape: f32[128,128], index: 3, kind: output, shape index: {}]  }
   0x1   :  { %s770_s14 = smov 0  }
   0x2 LB: > { %s25_s15 = sadd.s32 1, %s740_s13  ;;  %p633_p0 = scmp.ge.s32.totalorder %s744_s14, 1  ;;  %s744_s14 = sphi %s770_s14, %s13_s14   ;;  %s740_s13 = sphi %s768_s13, %s867_s13   ;;  %s736_s12 = sphi %s766_s12, %s866_s12  }
   0x3   : > { %p27_p1 = scmp.ge.s32.totalorder %s25_s15, 2  ;;  %p170_p2 = scmp.lt.s32.totalorder %s744_s14, 3 }
   0x5   : > { %s869_s15 = smov (%p27_p1, %s25_s15), 0  ;;  %p171_p3 = pnand %p633_p0, %p170_p2 }
   0x6   : > { %v341_v0 = vld [vmem:[%s863_s1] sm:$0xff] (!%p171_p3)  ;;  %v342_v1 = vld [vmem:[%s863_s1 + $0x8] sm:$0xff] (!%p171_p3)  ;;  %s634_s20 = sshll.u32 (!%p171_p3), %s736_s12, 3  ;;  %vm236_vm0 = vcmask (!%p171_p3), 130048  }
   0x7   : > { %174 = sbr.rel (%p171_p3) target bundleno = 244 (0xf4), region = 32  ;;  %v676_v2 = vpack.c.bf16 (!%p171_p3), %v342_v1, %v341_v0  ;;  %p206_p4 = scmp.lt.s32.totalorder (!%p171_p3), %s634_s20, 15 }
   0x9   : > { %677 = vmatprep.subr.bf16.mxu0 (!%p171_p3), %v676_v2  ;;  %680 = vmatprep.subr.bf16.mxu1 (!%p171_p3), %v676_v2 }
   0xa   : > { %679 = vmatpush3.bf16.msra.mxu0 (!%p171_p3), %v676_v2  ;;  %681 = vmatpush3.bf16.msra.mxu1 (!%p171_p3), %v676_v2 }
   0xe   : > { %s871_s20 = smov (!%p206_p4, %s634_s20), 15 }
   0xf   : > { %s635_s21 = sshll.u32 %s871_s20, 3 }
  0x10   : > { %s209_s24 = scalar_lea.vmem %s862_s0, %s635_s21  ;;  %s841_s4 = scalar_lea.vmem %s865_s3, %s635_s21 }
  0x11   : > { %v228_v3 = vld [vmem:[%s209_s24] sm:$0xff]  ;;  %v229_v5 = vld [vmem:[%s209_s24 + $0x8] sm:$0xff]  ;;  %v230_v7 = vld [vmem:[%s209_s24 + $0x10] sm:$0xff] }
  0x12   : > { %v232_v4 = vld [vmem:[%s209_s24 + $0x20] sm:$0xff]  ;;  %664 = vmatprep.mubr.msk.f32.mxu0 %vm236_vm0, %v228_v3  ;;  %v233_v6 = vld [vmem:[%s209_s24 + $0x28] sm:$0xff]  ;;  %v234_v8 = vld [vmem:[%s209_s24 + $0x30] sm:$0xff]  ;;  %v237_v9 = vsel %vm236_vm0, %v228_v3, 0.0  ;;  %v243_v10 = vsel %vm236_vm0, %v230_v7, 0.0  ;;  %v240_v13 = vsel %vm236_vm0, %v229_v5, 0.0  ;;  %v261_v19 = vmul.f32 %v228_v3, %v228_v3 }
  0x13   : > { %670 = vmatprep.mubr.msk.f32.mxu1 %vm236_vm0, %v232_v4  ;;  %665 = vmatmul.mubr.msk.f32.vlgmr.msra.gmra.mrb[0].mxu0 %vm236_vm0, %v229_v5  ;;  %v231_v11 = vld [vmem:[%s209_s24 + $0x18] sm:$0xff]  ;;  %v249_v15 = vsel %vm236_vm0, %v232_v4, 0.0  ;;  %v252_v16 = vsel %vm236_vm0, %v233_v6, 0.0  ;;  %v255_v17 = vsel %vm236_vm0, %v234_v8, 0.0  ;;  %v262_v20 = vmul.f32 %v229_v5, %v229_v5 }
  0x14   : > { %671 = vmatmul.mubr.msk.f32.vlgmr.msra.gmra.mrb[0].mxu1 %vm236_vm0, %v233_v6  ;;  %667 = vmatprep.mubr.msk.f32.mxu0 %vm236_vm0, %v230_v7  ;;  %v235_v12 = vld [vmem:[%s209_s24 + $0x38] sm:$0xff]  ;;  %v246_v14 = vsel %vm236_vm0, %v231_v11, 0.0  ;;  %v269_v21 = vsel %vm236_vm0, %v261_v19, 0.0  ;;  %v263_v23 = vmul.f32 %v230_v7, %v230_v7  ;;  %v264_v24 = vmul.f32 %v231_v11, %v231_v11 }
  0x15   : > { %673 = vmatprep.mubr.msk.f32.mxu1 %vm236_vm0, %v234_v8  ;;  %238 = vadd.xlane.f32.xlu0 %v237_v9  ;;  %v258_v18 = vsel %vm236_vm0, %v235_v12, 0.0  ;;  %v272_v22 = vsel %vm236_vm0, %v262_v20, 0.0  ;;  %v266_v27 = vmul.f32 %v233_v6, %v233_v6  ;;  %v265_v28 = vmul.f32 %v232_v4, %v232_v4 }
  0x16   : > { %244 = vadd.xlane.f32.xlu1 %v243_v10  ;;  %v275_v25 = vsel %vm236_vm0, %v263_v23, 0.0  ;;  %v278_v26 = vsel %vm236_vm0, %v264_v24, 0.0  ;;  %v268_v31 = vmul.f32 %v235_v12, %v235_v12  ;;  %v267_v32 = vmul.f32 %v234_v8, %v234_v8 }
  0x17   : > { %668 = vmatmul.mubr.msk.f32.gmra.mrb[2].mxu0 %vm236_vm0, %v231_v11  ;;  %v284_v29 = vsel %vm236_vm0, %v266_v27, 0.0  ;;  %v281_v30 = vsel %vm236_vm0, %v265_v28, 0.0  ;;  %v646_v27 = vld [vmem:[%s864_s2] ss:$0 sm:$0xff] }
  0x18   : > { %674 = vmatmul.mubr.msk.f32.gmra.mrb[2].mxu1 %vm236_vm0, %v235_v12  ;;  %v290_v33 = vsel %vm236_vm0, %v268_v31, 0.0  ;;  %v287_v34 = vsel %vm236_vm0, %v267_v32, 0.0 }
  0x19   : > { %241 = vadd.xlane.f32.xlu0 %v240_v13 }
  0x1a   : > { %247 = vadd.xlane.f32.xlu1 %v246_v14 }
  0x1d   : > { %250 = vadd.xlane.f32.xlu0 %v249_v15 }
  0x1e   : > { %253 = vadd.xlane.f32.xlu1 %v252_v16 }
  0x21   : > { %256 = vadd.xlane.f32.xlu0 %v255_v17 }
  0x22   : > { %259 = vadd.xlane.f32.xlu1 %v258_v18 }
  0x25   : > { %270 = vadd.xlane.f32.xlu0 %v269_v21 }
  0x26   : > { %273 = vadd.xlane.f32.xlu1 %v272_v22 }
  0x29   : > { %276 = vadd.xlane.f32.xlu0 %v275_v25 }
  0x2a   : > { %279 = vadd.xlane.f32.xlu1 %v278_v26 }
  0x2d   : > { %282 = vadd.xlane.f32.xlu0 %v281_v30 }
  0x2e   : > { %285 = vadd.xlane.f32.xlu1 %v284_v29 }
  0x31   : > { %288 = vadd.xlane.f32.xlu0 %v287_v34 }
  0x32   : > { %291 = vadd.xlane.f32.xlu1 %v290_v33 }
  0xa2   : > { %v239_v36 = vpop.xlane.xlu0 %238 }
  0xa3   : > { %v245_v35 = vpop.xlane.xlu1 %244  ;;  %v293_v47 = vmul.f32 0.0625, %v239_v36 }
  0xa4   : > { %v822_v54 = vmul.f32 0.0625, %v245_v35 }
  0xa5   : > { %v309_v53 = vmul.f32 %v293_v47, %v293_v47  ;;  %v478_v33 = vmul.f32 %v646_v27, %v293_v47 }
  0xa6   : > { %v242_v38 = vpop.xlane.xlu0 %241  ;;  %v311_v2 = vmul.f32 %v822_v54, %v822_v54 }
  0xa7   : > { %v248_v37 = vpop.xlane.xlu1 %247  ;;  %v294_v48 = vmul.f32 0.0625, %v242_v38 }
  0xa8   : > { %v296_v57 = vmul.f32 0.0625, %v248_v37 }
  0xa9   : > { %v310_v56 = vmul.f32 %v294_v48, %v294_v48  ;;  %v479_v28 = vmul.f32 %v646_v27, %v294_v48 }
  0xaa   : > { %v251_v40 = vpop.xlane.xlu0 %250  ;;  %v312_v6 = vmul.f32 %v296_v57, %v296_v57  ;;  %v481_v48 = vmul.f32 %v646_v27, %v296_v57 }
  0xab   : > { %v254_v39 = vpop.xlane.xlu1 %253  ;;  %v297_v52 = vmul.f32 0.0625, %v251_v40 }
  0xac   : > { %v298_v50 = vmul.f32 0.0625, %v254_v39 }
  0xad   : > { %v313_v62 = vmul.f32 %v297_v52, %v297_v52  ;;  %v482_v34 = vmul.f32 %v646_v27, %v297_v52 }
  0xae   : > { %v257_v42 = vpop.xlane.xlu0 %256  ;;  %v314_v59 = vmul.f32 %v298_v50, %v298_v50  ;;  %v483_v29 = vmul.f32 %v646_v27, %v298_v50 }
  0xaf   : > { %v260_v41 = vpop.xlane.xlu1 %259  ;;  %v824_v63 = vmul.f32 0.0625, %v257_v42 }
  0xb0   : > { %v300_v60 = vmul.f32 0.0625, %v260_v41  ;;  %v647_v41 = vld [vmem:[%s864_s2 + $0x1] ss:$0 sm:$0xff] }
  0xb1   : > { %v315_v12 = vmul.f32 %v824_v63, %v824_v63 }
  0xb2   : > { %v271_v44 = vpop.xlane.xlu0 %270  ;;  %v316_v9 = vmul.f32 %v300_v60, %v300_v60 }
  0xb3   : > { %v274_v43 = vpop.xlane.xlu1 %273  ;;  %v301_v55 = vmul.f32 0.0625, %v271_v44 }
  0xb4   : > { %v302_v58 = vmul.f32 0.0625, %v274_v43 }
  0xb5   : > { %v317_v3 = vsub.f32 %v301_v55, %v309_v53  ;;  %v480_v55 = vmul.f32 %v646_v27, %v822_v54 }
  0xb6   : > { %v277_v46 = vpop.xlane.xlu0 %276  ;;  %v318_v7 = vsub.f32 %v302_v58, %v310_v56  ;;  %v484_v56 = vmul.f32 %v646_v27, %v824_v63 }
  0xb7   : > { %v280_v45 = vpop.xlane.xlu1 %279  ;;  %v303_v4 = vmul.f32 0.0625, %v277_v46  ;;  %v325_v15 = vadd.f32 1e-05, %v317_v3 }
  0xb8   : > { %v304_v8 = vmul.f32 0.0625, %v280_v45  ;;  %v326_v17 = vadd.f32 1e-05, %v318_v7 }
  0xb9   : > { %v319_v16 = vsub.f32 %v303_v4, %v311_v2  ;;  %706 = vrsqrt.f32 %v325_v15 }
  0xba   : > { %v283_v51 = vpop.xlane.xlu0 %282  ;;  %v320_v18 = vsub.f32 %v304_v8, %v312_v6  ;;  %708 = vrsqrt.f32 %v326_v17 }
  0xbb   : > { %v286_v49 = vpop.xlane.xlu1 %285  ;;  %v305_v0 = vmul.f32 0.0625, %v283_v51  ;;  %v327_v23 = vadd.f32 1e-05, %v319_v16 }
  0xbc   : > { %v306_v61 = vmul.f32 0.0625, %v286_v49  ;;  %v328_v24 = vadd.f32 1e-05, %v320_v18  ;;  %v485_v49 = vmul.f32 %v646_v27, %v300_v60 }
  0xbd   : > { %v321_v13 = vsub.f32 %v305_v0, %v313_v62 }
  0xbe   : > { %v289_v5 = vpop.xlane.xlu0 %288  ;;  %v322_v10 = vsub.f32 %v306_v61, %v314_v59 }
  0xbf   : > { %v292_v1 = vpop.xlane.xlu1 %291  ;;  %v307_v14 = vmul.f32 0.0625, %v289_v5  ;;  %v329_v21 = vadd.f32 1e-05, %v321_v13 }
  0xc0   : > { %v308_v11 = vmul.f32 0.0625, %v292_v1  ;;  %v330_v19 = vadd.f32 1e-05, %v322_v10 }
  0xc1   : > { %v323_v22 = vsub.f32 %v307_v14, %v315_v12 }
  0xc2   : > { %v324_v20 = vsub.f32 %v308_v11, %v316_v9  ;;  %710 = vrsqrt.f32 %v330_v19 }
  0xc3   : > { %712 = vrsqrt.f32 %v329_v21  ;;  %v331_v26 = vadd.f32 1e-05, %v323_v22  ;;  %v707_v30 = vpop.eup %706 }
  0xc4   : > { %v332_v25 = vadd.f32 1e-05, %v324_v20  ;;  %714 = vrsqrt.f32 %v327_v23  ;;  %v709_v35 = vpop.eup %708 }
  0xc5   : > { %716 = vrsqrt.f32 %v328_v24 }
  0xc6   : > { %718 = vrsqrt.f32 %v332_v25 }
  0xc7   : > { %720 = vrsqrt.f32 %v331_v26 }
  0xcc   : > { %v711_v40 = vpop.eup %710 }
  0xcd   : > { %v713_v44 = vpop.eup %712 }
  0xce   : > { %v715_v47 = vpop.eup %714 }
  0xcf   : > { %v717_v58 = vpop.eup %716 }
  0xd0   : > { %v719_v1 = vpop.eup %718 }
  0xd1   : > { %v721_v54 = vpop.eup %720 }
  0xe6   : > { %v666_v31 = vpop.f32.mrb[0].mxu0 }
  0xe7   : > { %v672_v32 = vpop.f32.mrb[0].mxu1  ;;  %v487_v36 = vsub.f32 %v666_v31, %v479_v28  ;;  %v433_v38 = vpop.f32.mrb[1].mxu0 }
  0xe8   : > { %v491_v37 = vsub.f32 %v672_v32, %v483_v29  ;;  %v453_v39 = vpop.f32.mrb[1].mxu1  ;;  %v486_v42 = vsub.f32 %v433_v38, %v478_v33 }
  0xe9   : > { %v490_v43 = vsub.f32 %v453_v39, %v482_v34  ;;  %v495_v45 = vmul.f32 %v709_v35, %v487_v36 }
  0xea   : > { %v499_v46 = vmul.f32 %v711_v40, %v491_v37  ;;  %v494_v50 = vmul.f32 %v707_v30, %v486_v42  ;;  %v669_v52 = vpop.f32.mrb[2].mxu0 }
  0xeb   : > { %v498_v51 = vmul.f32 %v713_v44, %v490_v43  ;;  %v675_v53 = vpop.f32.mrb[2].mxu1  ;;  %v507_v57 = vadd.f32 %v647_v41, %v495_v45  ;;  %v489_v60 = vsub.f32 %v669_v52, %v481_v48  ;;  %v443_v62 = vpop.f32.mrb[3].mxu0 }
  0xec   : > { %v511_v59 = vadd.f32 %v647_v41, %v499_v46  ;;  %v493_v61 = vsub.f32 %v675_v53, %v485_v49  ;;  %v463_v0 = vpop.f32.mrb[3].mxu1  ;;  %v506_v2 = vadd.f32 %v647_v41, %v494_v50  ;;  %v488_v4 = vsub.f32 %v443_v62, %v480_v55 }
  0xed   : > { %v510_v3 = vadd.f32 %v647_v41, %v498_v51  ;;  %v492_v5 = vsub.f32 %v463_v0, %v484_v56  ;;  %515 = vst [vmem:[%s841_s4 + $0x8] sm:$0xff] %v507_v57  ;;  %v497_v63 = vmul.f32 %v717_v58, %v489_v60 }
  0xee   : > { %519 = vst [vmem:[%s841_s4 + $0x28] sm:$0xff] %v511_v59  ;;  %v501_v6 = vmul.f32 %v719_v1, %v493_v61  ;;  %514 = vst [vmem:[%s841_s4] sm:$0xff] %v506_v2  ;;  %v496_v7 = vmul.f32 %v715_v47, %v488_v4 }
  0xef   : > { %518 = vst [vmem:[%s841_s4 + $0x20] sm:$0xff] %v510_v3  ;;  %v500_v8 = vmul.f32 %v721_v54, %v492_v5  ;;  %v509_v9 = vadd.f32 %v647_v41, %v497_v63 }
  0xf0   : > { %v513_v10 = vadd.f32 %v647_v41, %v501_v6  ;;  %v508_v11 = vadd.f32 %v647_v41, %v496_v7 }
  0xf1   : > { %v512_v12 = vadd.f32 %v647_v41, %v500_v8  ;;  %517 = vst [vmem:[%s841_s4 + $0x18] sm:$0xff] %v509_v9 }
  0xf2   : > { %521 = vst [vmem:[%s841_s4 + $0x38] sm:$0xff] %v513_v10  ;;  %516 = vst [vmem:[%s841_s4 + $0x10] sm:$0xff] %v508_v11 }
  0xf3   : > { %520 = vst [vmem:[%s841_s4 + $0x30] sm:$0xff] %v512_v12 }
  0xf4 PF: > { %s13_s14 = sadd.s32 1, %s744_s14   ;;  %s866_s12 = smov %s740_s13 }
  0xf5   : > { %p10_p5 = scmp.ge.s32.totalorder %s13_s14, 4   ;;  %s867_s13 = smov %s869_s15 }
  0xf7   :  { %12 = sbr.rel (!%p10_p5) target bundleno = 2 (0x2), region = 68 }

</bundles_post_ra>
